<compile_context>
chip_gen: v7x
topology: tpu7x:2x2x1
jax: 0.10.0
libtpu: 0.0.40
codegen_flags: <defaults>
</compile_context>

<pallas_src>
import functools
import math

import jax
import jax.numpy as jnp
from jax.experimental import pallas as pl
from jax.experimental.pallas import tpu as pltpu

LATENT_DIM = 4
NHIDDEN = 20
OBS_DIM = 2


def decoder_kernel(z_ref, w1_ref, b1_ref, w2_ref, b2_ref, out_ref):
    # z_ref:  (latent_dim, tn)   feature-major, lane-dense
    # w1_ref: (nhidden, latent_dim), b1_ref: (nhidden, 1)
    # w2_ref: (obs_dim, nhidden),   b2_ref: (obs_dim, 1)
    # out_ref: (obs_dim, tn)
    z = z_ref[...]

    # fc1 + ReLU : (nhidden, tn)
    h = jnp.dot(w1_ref[...], z, preferred_element_type=jnp.float32) + b1_ref[...]
    h = jnp.maximum(h, 0.0)

    # fc2 : (obs_dim, tn)
    o = jnp.dot(w2_ref[...], h, preferred_element_type=jnp.float32) + b2_ref[...]
    out_ref[...] = o.astype(out_ref.dtype)


@functools.partial(jax.jit, static_argnames=("tn",))
def _decoder_pallas(z_t, w1, b1, w2, b2, *, tn):
    # z_t: (latent_dim, n_pad) with n_pad % tn == 0
    latent_dim, n_pad = z_t.shape
    nhidden, _ = w1.shape
    obs_dim, _ = w2.shape

    grid = (n_pad // tn,)
    return pl.pallas_call(
        decoder_kernel,
        out_shape=jax.ShapeDtypeStruct((obs_dim, n_pad), z_t.dtype),
        grid_spec=pltpu.PrefetchScalarGridSpec(
            num_scalar_prefetch=0,
            grid=grid,
            in_specs=[
                pl.BlockSpec((latent_dim, tn), lambda i: (0, i)),      # z columns
                pl.BlockSpec((nhidden, latent_dim), lambda i: (0, 0)),  # w1 (full)
                pl.BlockSpec((nhidden, 1), lambda i: (0, 0)),           # b1 (full)
                pl.BlockSpec((obs_dim, nhidden), lambda i: (0, 0)),     # w2 (full)
                pl.BlockSpec((obs_dim, 1), lambda i: (0, 0)),           # b2 (full)
            ],
            out_specs=pl.BlockSpec((obs_dim, tn), lambda i: (0, i)),
        ),
        compiler_params=pltpu.CompilerParams(
            dimension_semantics=("parallel",),   # split grid steps across TCs (v7x)
        ),
    )(z_t, w1, b1, w2, b2)


def decoder_forward(z, w1, b1, w2, b2, *, tn=1024):
    """z: (..., latent_dim); w1: (nhidden, latent_dim); b1: (nhidden, 1);
    w2: (obs_dim, nhidden); b2: (obs_dim, 1). Returns (..., obs_dim)."""
    lead_shape = z.shape[:-1]
    latent_dim = z.shape[-1]
    obs_dim = w2.shape[0]
    n = math.prod(lead_shape) if lead_shape else 1
    z2 = z.reshape(n, latent_dim)

    # Pick an effective lane tile: at least 128, at most tn, and pad rows so
    # the grid divides evenly (no divisibility assert).
    n_aligned = ((n + 127) // 128) * 128
    tn_eff = min(tn, n_aligned)
    n_pad = pl.cdiv(n, tn_eff) * tn_eff
    if n_pad != n:
        z2 = jnp.pad(z2, ((0, n_pad - n), (0, 0)))

    # Feature-major / lane-dense layout for the kernel.
    z_t = z2.T  # (latent_dim, n_pad)

    out_t = _decoder_pallas(z_t, w1, b1, w2, b2, tn=tn_eff)  # (obs_dim, n_pad)
    out = out_t.T[:n]  # back to row-major (n, obs_dim)
    return out.reshape(*lead_shape, obs_dim)


def init_params(key, latent_dim=LATENT_DIM, nhidden=NHIDDEN, obs_dim=OBS_DIM):
    # PyTorch Linear default init: U(-1/sqrt(fan_in), 1/sqrt(fan_in)).
    # Weights stored (out, in) like PyTorch; biases stored as (out, 1) columns.
    k1, k2, k3, k4 = jax.random.split(key, 4)
    lim1 = 1.0 / jnp.sqrt(latent_dim)
    lim2 = 1.0 / jnp.sqrt(nhidden)
    w1 = jax.random.uniform(k1, (nhidden, latent_dim), jnp.float32, -lim1, lim1)
    b1 = jax.random.uniform(k2, (nhidden, 1), jnp.float32, -lim1, lim1)
    w2 = jax.random.uniform(k3, (obs_dim, nhidden), jnp.float32, -lim2, lim2)
    b2 = jax.random.uniform(k4, (obs_dim, 1), jnp.float32, -lim2, lim2)
    return w1, b1, w2, b2


def reference_forward(z, w1, b1, w2, b2):
    h = jnp.maximum(z @ w1.T + b1[:, 0], 0.0)
    return h @ w2.T + b2[:, 0]


if __name__ == "__main__":
    key = jax.random.PRNGKey(0)
    kp, kz1, kz2 = jax.random.split(key, 3)

    w1, b1, w2, b2 = init_params(kp)

    # Case 1: z = (batch=2, seq=8, latent_dim=4)
    z = jax.random.normal(kz1, (2, 8, LATENT_DIM), dtype=jnp.float32)
    out = decoder_forward(z, w1, b1, w2, b2)
    out = jax.block_until_ready(out)
    ref = reference_forward(z.reshape(-1, LATENT_DIM), w1, b1, w2, b2).reshape(
        2, 8, OBS_DIM
    )
    assert out.shape == (2, 8, OBS_DIM), out.shape
    assert jnp.allclose(out, ref, atol=1e-5, rtol=1e-5), "mismatch vs reference (case 1)"

    # Case 2: odd row count (exercises the padding / cdiv path, no assert).
    z2 = jax.random.normal(kz2, (3, 7, LATENT_DIM), dtype=jnp.float32)
    out2 = jax.block_until_ready(decoder_forward(z2, w1, b1, w2, b2))
    ref2 = reference_forward(z2.reshape(-1, LATENT_DIM), w1, b1, w2, b2).reshape(
        3, 7, OBS_DIM
    )
    assert out2.shape == (3, 7, OBS_DIM), out2.shape
    assert jnp.allclose(out2, ref2, atol=1e-5, rtol=1e-5), "mismatch vs reference (case 2)"

    print("KERNEL_OK")
</pallas_src>

<mosaic_0001>
module attributes {stable_mosaic.version = 11 : i64} {
  func.func @decoder_kernel(%arg0: i32, %arg1: memref<4x128xf32, #tpu.memory_space<vmem>>, %arg2: memref<20x4xf32, #tpu.memory_space<vmem>>, %arg3: memref<20x1xf32, #tpu.memory_space<vmem>>, %arg4: memref<2x20xf32, #tpu.memory_space<vmem>>, %arg5: memref<2x1xf32, #tpu.memory_space<vmem>>, %arg6: memref<2x128xf32, #tpu.memory_space<vmem>>) attributes {dimension_semantics = [#tpu.dimension_semantics<parallel>], iteration_bounds = array<i64: 1>, scalar_prefetch = 0 : i64, scratch_operands = 0 : i64, tpu.core_type = #tpu.core_type<tc>, window_params = [{transform_indices = @transform_0, window_bounds = array<i64: 4, 128>}, {pipeline_mode = #tpu.pipeline_mode<synchronous>, transform_indices = @transform_1, window_bounds = array<i64: 20, 4>}, {pipeline_mode = #tpu.pipeline_mode<synchronous>, transform_indices = @transform_2, window_bounds = array<i64: 20, 1>}, {pipeline_mode = #tpu.pipeline_mode<synchronous>, transform_indices = @transform_3, window_bounds = array<i64: 2, 20>}, {pipeline_mode = #tpu.pipeline_mode<synchronous>, transform_indices = @transform_4, window_bounds = array<i64: 2, 1>}, {transform_indices = @transform_5, window_bounds = array<i64: 2, 128>}]} {
    %c0 = arith.constant 0 : index
    %c0_0 = arith.constant 0 : index
    %0 = vector.load %arg1[%c0, %c0_0] : memref<4x128xf32, #tpu.memory_space<vmem>>, vector<4x128xf32>
    %c0_1 = arith.constant 0 : index
    %c0_2 = arith.constant 0 : index
    %1 = vector.load %arg2[%c0_1, %c0_2] : memref<20x4xf32, #tpu.memory_space<vmem>>, vector<20x4xf32>
    %cst = arith.constant dense<0.000000e+00> : vector<20x128xf32>
    %2 = tpu.matmul %1, %0, %cst {dimension_numbers = #tpu.dot_dimension_numbers<[1], [0], [0], [1], [0, 0, 1, 1], [], []>} : vector<20x4xf32>, vector<4x128xf32>, vector<20x128xf32> -> vector<20x128xf32>
    %c0_3 = arith.constant 0 : index
    %c0_4 = arith.constant 0 : index
    %3 = vector.load %arg3[%c0_3, %c0_4] : memref<20x1xf32, #tpu.memory_space<vmem>>, vector<20x1xf32>
    %4 = vector.broadcast %3 : vector<20x1xf32> to vector<20x128xf32>
    %5 = arith.addf %2, %4 : vector<20x128xf32>
    %cst_5 = arith.constant 0.000000e+00 : f32
    %6 = vector.broadcast %cst_5 : f32 to vector<20x128xf32>
    %7 = arith.maximumf %5, %6 : vector<20x128xf32>
    %c0_6 = arith.constant 0 : index
    %c0_7 = arith.constant 0 : index
    %8 = vector.load %arg4[%c0_6, %c0_7] : memref<2x20xf32, #tpu.memory_space<vmem>>, vector<2x20xf32>
    %cst_8 = arith.constant dense<0.000000e+00> : vector<2x128xf32>
    %9 = tpu.matmul %8, %7, %cst_8 {dimension_numbers = #tpu.dot_dimension_numbers<[1], [0], [0], [1], [0, 0, 1, 1], [], []>} : vector<2x20xf32>, vector<20x128xf32>, vector<2x128xf32> -> vector<2x128xf32>
    %c0_9 = arith.constant 0 : index
    %c0_10 = arith.constant 0 : index
    %10 = vector.load %arg5[%c0_9, %c0_10] : memref<2x1xf32, #tpu.memory_space<vmem>>, vector<2x1xf32>
    %11 = vector.broadcast %10 : vector<2x1xf32> to vector<2x128xf32>
    %12 = arith.addf %9, %11 : vector<2x128xf32>
    %c0_11 = arith.constant 0 : index
    %c0_12 = arith.constant 0 : index
    %13 = vector.load %arg6[%c0_11, %c0_12] : memref<2x128xf32, #tpu.memory_space<vmem>>, vector<2x128xf32>
    tpu.vector_store %arg6[%c0_11, %c0_12], %12 {strides = array<i32>} : memref<2x128xf32, #tpu.memory_space<vmem>>, vector<2x128xf32>,
    return
  }
  func.func @transform_0(%arg0: i32) -> (i32, i32) {
    %c0_i32 = arith.constant 0 : i32
    %c0_i32_0 = arith.constant 0 : i32
    return %c0_i32, %arg0 : i32, i32
  }
  func.func @transform_1(%arg0: i32) -> (i32, i32) {
    %c0_i32 = arith.constant 0 : i32
    %c0_i32_0 = arith.constant 0 : i32
    %c0_i32_1 = arith.constant 0 : i32
    return %c0_i32, %c0_i32_0 : i32, i32
  }
  func.func @transform_2(%arg0: i32) -> (i32, i32) {
    %c0_i32 = arith.constant 0 : i32
    %c0_i32_0 = arith.constant 0 : i32
    %c0_i32_1 = arith.constant 0 : i32
    return %c0_i32, %c0_i32_0 : i32, i32
  }
  func.func @transform_3(%arg0: i32) -> (i32, i32) {
    %c0_i32 = arith.constant 0 : i32
    %c0_i32_0 = arith.constant 0 : i32
    %c0_i32_1 = arith.constant 0 : i32
    return %c0_i32, %c0_i32_0 : i32, i32
  }
  func.func @transform_4(%arg0: i32) -> (i32, i32) {
    %c0_i32 = arith.constant 0 : i32
    %c0_i32_0 = arith.constant 0 : i32
    %c0_i32_1 = arith.constant 0 : i32
    return %c0_i32, %c0_i32_0 : i32, i32
  }
  func.func @transform_5(%arg0: i32) -> (i32, i32) {
    %c0_i32 = arith.constant 0 : i32
    %c0_i32_0 = arith.constant 0 : i32
    return %c0_i32, %arg0 : i32, i32
  }
}

</mosaic_0001>

<bundles_post_ra>
// kernel: _decoder_pallas.1
= control target key start
LH: loop header
LB: loop body
LE: loop exit
PB: predicated region body
PF: predicated region fallthrough
CT: control target
= control target key end

     0   :  { %vm53_vm0 = vcmask 1043456   ;;  %v307_v2 = vmov 0.0   ;;  %vm308_vm1 = vmmov 0   ;;  %vm43_vm2 = vcmask 31744   ;;  %s390_s0 = inlined_call_operand.vmem [shape: f32[4,128], index: 0, kind: input, shape index: {}]   ;;  %s391_s1 = inlined_call_operand.vmem [shape: f32[20,4], index: 1, kind: input, shape index: {}]   ;;  %s392_s2 = inlined_call_operand.vmem [shape: f32[20,1], index: 2, kind: input, shape index: {}]   ;;  %s393_s3 = inlined_call_operand.vmem [shape: f32[2,20], index: 3, kind: input, shape index: {}]   ;;  %s394_s4 = inlined_call_operand.vmem [shape: f32[2,1], index: 4, kind: input, shape index: {}]   ;;  %s395_s5 = inlined_call_operand.hbm [shape: f32[2,128], index: 5, kind: output, shape index: {}]  }
   0x1   :  { %v21_v0 = vld [vmem:[%s390_s0] sm:$0xf]  ;;  %253 = vmatprep.subr.mxu0 %v307_v2  ;;  %255 = vmatprep.mubr.msk.f32.mxu0 %vm308_vm1, %v307_v2  ;;  %v309_v4 = vmov 0   ;;  %v27_v5 = vld [vmem:[%s392_s2 + $0x10] sm:$0xf] }
   0x2   :  { %v22_v1 = vld [vmem:[%s391_s1] sm:$0xff]  ;;  %254 = vmatpush3.msk.msra.mxu0 %vm53_vm0, %v21_v0  ;;  %281 = vset.pattern.permute.xlu0 %v309_v4 }
   0x3   :  { %v25_v3 = vld [vmem:[%s392_s2] sm:$0xff]  ;;  %256 = vmatmul.mubr.msk.f32.vlgmr.msra.gmra.mrb[0].mxu0 %vm43_vm2, %v22_v1 }
   0x4   :  { %30 = vperm.xlu0 %281, %v25_v3  }
   0x5   :  { %10 = vsyncpa [#allocation3], 0  ;;  %258 = vmatprep.mubr.msk.f32.mxu0 %vm308_vm1, %v307_v2  ;;  %v23_v6 = vld [vmem:[%s391_s1 + $0x8] sm:$0xff]  ;;  %282 = vset.pattern.permute.xlu1 %v309_v4  ;;  %v141_v8 = vld [vmem:[%s394_s4] sm:$0x3]  ;;  %v310_v10 = vmov 0.0|0.0  }
   0x6   :  { %v26_v7 = vld [vmem:[%s392_s2 + $0x8] sm:$0xff]  ;;  %40 = vperm.xlu1 %282, %v27_v5   ;;  %270 = vmatprep.mubr.msk.f32.mxu1 %vm308_vm1, %v307_v2  ;;  %v24_v9 = vld [vmem:[%s391_s1 + $0x10] sm:$0xf]  ;;  %v140_v27 = vld [vmem:[%s393_s3] sm:$0x3]  ;;  %vm147_vm3 = vcmask 162816  }
   0x7   :  { %259 = vmatmul.mubr.msk.f32.gmra.mrb[2].mxu0 %vm43_vm2, %v23_v6  ;;  %273 = vmatprep.subr.bf16.mxu1 %v310_v10  ;;  %s311_s4 = smov [#allocation2]  }
   0x8   :  { %35 = vperm.xlu0 %281, %v26_v7   ;;  %261 = vmatprep.mubr.msk.f32.mxu0 %vm308_vm1, %v307_v2  ;;  %s231_s8 = sshll.u32 %s311_s4, 4  ;;  %s232_s8 = int_to_ptr.vmem [resolvable:$true] %s231_s8 }
   0x9   :  { %s283_s9 = scalar_lea.vmem %s232_s8, 32  ;;  %p288_p1 = scmp.lt.s32.totalorder %s232_s8, %s232_s8 }
   0xa   :  { %144 = vperm.xlu1 %282, %v141_v8   ;;  %p284_p0 = scmp.ne.s32.totalorder %s232_s8, %s283_s9  ;;  %p289_p2 = scmp.lt.s32.totalorder %s283_s9, %s283_s9 }
   0xb   :  { %262 = vmatmul.mubr.msk.f32.gmra.mrb[4].mxu0 %vm43_vm2, %v24_v9 }
   0xc   :  { %p290_p3 = por %p289_p2, %p288_p1 }
   0xe   :  { %p291_p4 = pnand %p290_p3, %p284_p0 }
  0x83   :  { %v31_v11 = vpop.permute.xlu0 %30 }
  0x85   :  { %v41_v21 = vpop.permute.xlu1 %40 }
  0x87   :  { %v36_v15 = vpop.permute.xlu0 %35 }
  0x89   :  { %v145_v28 = vpop.permute.xlu1 %144 }
  0xd6   :  { %v123_v12 = vpop.f32.mrb[0].mxu0 }
  0xd7   :  { %v257_v13 = vpop.f32.mrb[1].mxu0  ;;  %v124_v14 = vadd.f32 %v123_v12, %v31_v11 }
  0xd9   :  { %v137_v19 = vmax.f32 %v124_v14, 0.0 }
  0xda   :  { %v128_v16 = vpop.f32.mrb[2].mxu0 }
  0xdb   :  { %v129_v17 = vadd.f32 %v128_v16, %v36_v15  ;;  %v260_v18 = vpop.f32.mrb[3].mxu0 }
  0xdd   :  { %v138_v20 = vmax.f32 %v129_v17, 0.0 }
  0xde   :  { %v133_v22 = vpop.f32.mrb[4].mxu0 }
  0xdf   :  { %v134_v23 = vadd.f32 %v133_v22, %v41_v21  ;;  %v263_v24 = vpop.f32.mrb[5].mxu0  ;;  %v274_v25 = vpack.c.bf16 %v138_v20, %v137_v19 }
  0xe1   :  { %v139_v26 = vmax.f32 %v134_v23, 0.0  ;;  %275 = vmatpush3.bf16.msra.mxu1 %v274_v25 }
  0xe2   :  { %268 = vmatprep.subr.mxu1 %v307_v2 }
  0xe5   :  { %269 = vmatpush3.msk.msra.mxu1 %vm53_vm0, %v139_v26 }
  0xe6   :  { %271 = vmatmul.mubr.msk.f32.vlgmr.msra.gmra.mrb[0].mxu1 %vm147_vm3, %v140_v27 }
 0x1b9   :  { %v220_v29 = vpop.f32.mrb[0].mxu1 }
 0x1ba   :  { %v221_v30 = vadd.f32 %v220_v29, %v145_v28  ;;  %v272_v31 = vpop.f32.mrb[1].mxu1 }
 0x1bc   :  { %224 = vst [vmem:[#allocation2] sm:$0x3] %v221_v30 }
 0x1bd   :  { %294 = shalt.err (!%p291_p4)
}
 0x1be   :  { %s295_s11 = scalar_lea.hbm %s395_s5, 32 }
 0x1bf   :  { %p296_p5 = scmp.ne.s32.totalorder %s395_s5, %s295_s11  ;;  %p299_p6 = scmp.lt.u32.totalorder %s295_s11, %s395_s5 }
 0x1c1   :  { %p301_p7 = pnand %p299_p6, %p296_p5 }
 0x1c3   :  { %304 = shalt.err (!%p301_p7)
}
 0x1c4   :  { %234 = dma.vmem_to_hbm [thread:$0]  %s232_s8, 32, %s395_s5, [#allocation3]  }
 0x1c5   :  { %305 = dma.done.wait [#allocation3], 32  }
 0x1c6   :  { %306 = vsyncadd [#allocation3], 4294967264 }
 0x1c7   :  { %238 = vsyncpa [#allocation3], 1 }

</bundles_post_ra>
